<compile_context>
chip_gen: v6e
topology: v6e:2x2x1
jax: 0.10.0
libtpu: 0.0.40
codegen_flags: <defaults>
</compile_context>

<pallas_src>
import jax
import jax.numpy as jnp
from jax.experimental import pallas as pl
from jax.experimental.pallas import tpu as pltpu


def _make_logreg_kernel(n_features, kf, mask_last_f_tile):
    def kernel(x_ref, w_ref, b_ref, o_ref, acc_ref):
        # x_ref: (TB, kf) f32   w_ref: (kf, 1) f32   b_ref: (1, 1) f32
        # o_ref: (TB, 1) f32    acc_ref: (TB, 1) f32 scratch
        k = pl.program_id(1)

        @pl.when(k == 0)
        def _init():
            acc_ref[...] = jnp.zeros_like(acc_ref)

        x = x_ref[...]
        if mask_last_f_tile:
            # Ragged last F tile: zero lanes past the true feature count so the
            # unspecified out-of-bounds pad data cannot contribute to the dot
            # (the weight column is also zero-padded in the wrapper).
            lane = jax.lax.broadcasted_iota(jnp.int32, x.shape, 1)
            x = jnp.where(lane < (n_features - k * kf), x, 0.0)

        # (TB, kf) @ (kf, 1): MXU multiply+reduce, f32 accumulation.
        acc_ref[...] += jnp.dot(
            x, w_ref[...],
            preferred_element_type=jnp.float32,
            precision=jax.lax.Precision.HIGHEST,
        )

        @pl.when(k == pl.num_programs(1) - 1)
        def _finalize():
            o_ref[...] = jax.nn.sigmoid(acc_ref[...] + b_ref[...]).astype(o_ref.dtype)

    return kernel


def _pick_tiles(batch, n_features, *, x_tile_bytes, max_kf):
    """Choose (batch_tile, feature_tile).

    Feature tile: the full F when small enough, else a 128-lane-aligned chunk
    (keeps the double-buffered x tile bounded for huge F).
    Batch tile: targets ~x_tile_bytes of f32 x per grid step (amortizes the
    ~0.35 us per-step overhead), rounded to the 8-sublane granule, never
    larger than the (8-rounded) batch itself.  Resident VMEM per step stays
    ~2*x_tile_bytes + O(kB), well under the 32 MiB scoped limit on every
    generation (incl. v7x's 64 MiB physical VMEM).
    """
    assert max_kf % 128 == 0
    kf = n_features if n_features <= max_kf else max_kf
    tb = max(8, (x_tile_bytes // (kf * 4)) // 8 * 8)
    tb = min(tb, pl.cdiv(batch, 8) * 8)
    return tb, kf


def logistic_forward(x, weight, bias, *, force_pallas=False,
                     x_tile_bytes=4 * 1024 * 1024, max_kf=4096,
                     small_problem_bytes=256 * 1024):
    """sigmoid(x @ weight.T + bias) for torch-style nn.Linear(F, 1) params.

    x: (..., F) f32; weight: (1, F); bias: (1,).  Returns (..., 1) f32.
    """
    orig_shape = x.shape
    F = orig_shape[-1]
    x2d = x.reshape(-1, F)          # collapse leading dims (no data movement)
    B = x2d.shape[0]

    if x2d.dtype != jnp.float32:
        x2d = x2d.astype(jnp.float32)
    w = weight.reshape(1, F).astype(jnp.float32)
    b = bias.reshape(1,).astype(jnp.float32)

    # Small-problem fast path: fixed pallas_call overhead dominates; XLA's
    # fused matvec is strictly faster there.
    if not force_pallas and B * F * 4 < small_problem_bytes:
        y = jax.nn.sigmoid(x2d @ w.T + b)
        return y.reshape(*orig_shape[:-1], 1).astype(x.dtype)

    tb, kf = _pick_tiles(B, F, x_tile_bytes=x_tile_bytes, max_kf=max_kf)
    b_tiles = pl.cdiv(B, tb)
    f_tiles = pl.cdiv(F, kf)
    mask_last = (F % kf) != 0

    # Tiny layout plumbing only (never touches x): weight as a zero-padded
    # (f_tiles*kf, 1) column, bias as a (1, 1) tile.
    w_col = w.reshape(F, 1)
    if mask_last:
        w_col = jnp.pad(w_col, ((0, f_tiles * kf - F), (0, 0)))
    b_tile = b.reshape(1, 1)

    out = pl.pallas_call(
        _make_logreg_kernel(F, kf, mask_last),
        out_shape=jax.ShapeDtypeStruct((B, 1), jnp.float32),
        grid_spec=pltpu.PrefetchScalarGridSpec(
            num_scalar_prefetch=0,
            grid=(b_tiles, f_tiles),               # reduction (F) axis last
            in_specs=[
                pl.BlockSpec((tb, kf), lambda i, k: (i, k)),  # x: read once, pipelined
                pl.BlockSpec((kf, 1), lambda i, k: (k, 0)),   # weight column
                pl.BlockSpec((1, 1), lambda i, k: (0, 0)),    # bias
            ],
            out_specs=pl.BlockSpec((tb, 1), lambda i, k: (i, 0)),
            scratch_shapes=[pltpu.VMEM((tb, 1), jnp.float32)],
        ),
        compiler_params=pltpu.CompilerParams(
            # Batch axis parallel (2-TC sharding on v7x; HBM-bound so at best a
            # mild win), F reduction axis arbitrary.
            dimension_semantics=("parallel", "arbitrary"),
            # Resident footprint is ~2*x_tile + O(kB); 32 MiB is safe on
            # v5e/v6e (128 MiB) and v7x (64 MiB) alike.
            vmem_limit_bytes=32 * 1024 * 1024,
        ),
    )(x2d, w_col, b_tile)

    return out.reshape(*orig_shape[:-1], 1).astype(x.dtype)


if __name__ == "__main__":
    key = jax.random.PRNGKey(0)
    kx, kw, kb, kx2, kw2, kb2 = jax.random.split(key, 6)

    fwd = jax.jit(
        logistic_forward,
        static_argnames=("force_pallas", "x_tile_bytes", "max_kf",
                         "small_problem_bytes"),
    )

    # Exact-f32 reference (VPU multiply + reduce; avoids XLA's own
    # default-precision MXU path so the check is against true f32 math).
    def reference(x, w, b):
        return jax.nn.sigmoid(jnp.sum(x * w, axis=-1, keepdims=True) + b)

    # Tolerance covers the MXU's f32-via-bf16-pass matmul paths across
    # generations while remaining a meaningful correctness check.
    TOL = 2e-3

    # Case 1: shapes implied by the module (batch=8, n_inp_features=32),
    # Pallas path forced so the kernel itself is exercised.
    B, F = 8, 32
    x = jax.random.normal(kx, (B, F), dtype=jnp.float32)
    bound = 1.0 / float(F) ** 0.5
    weight = jax.random.uniform(kw, (1, F), minval=-bound, maxval=bound,
                                dtype=jnp.float32)
    bias = jax.random.uniform(kb, (1,), minval=-bound, maxval=bound,
                              dtype=jnp.float32)

    y = fwd(x, weight, bias, force_pallas=True)
    jax.block_until_ready(y)
    y_ref = reference(x, weight, bias)
    assert y.shape == (B, 1)
    assert jnp.allclose(y, y_ref, atol=TOL, rtol=TOL), "case 1 mismatch"

    # Case 2: ragged batch + tiled/ragged F reduction axis (exercises the
    # accumulator, the masked last F tile, and dropped out-of-bounds rows).
    B2, F2 = 13, 300
    x2 = jax.random.normal(kx2, (B2, F2), dtype=jnp.float32)
    bound2 = 1.0 / float(F2) ** 0.5
    weight2 = jax.random.uniform(kw2, (1, F2), minval=-bound2, maxval=bound2,
                                 dtype=jnp.float32)
    bias2 = jax.random.uniform(kb2, (1,), minval=-bound2, maxval=bound2,
                               dtype=jnp.float32)

    y2 = fwd(x2, weight2, bias2, force_pallas=True, max_kf=128)
    jax.block_until_ready(y2)
    y2_ref = reference(x2, weight2, bias2)
    assert y2.shape == (B2, 1)
    assert jnp.allclose(y2, y2_ref, atol=TOL, rtol=TOL), "case 2 mismatch"

    # Case 3: default dispatch — tiny problem takes the XLA fast path.
    y3 = fwd(x, weight, bias)
    jax.block_until_ready(y3)
    assert jnp.allclose(y3, y_ref, atol=TOL, rtol=TOL), "case 3 mismatch"

    print("KERNEL_OK")
</pallas_src>

<mosaic_0001>
module attributes {stable_mosaic.version = 11 : i64} {
  func.func @kernel(%arg0: i32, %arg1: i32, %arg2: memref<8x32xf32, #tpu.memory_space<vmem>>, %arg3: memref<32x1xf32, #tpu.memory_space<vmem>>, %arg4: memref<1x1xf32, #tpu.memory_space<vmem>>, %arg5: memref<8x1xf32, #tpu.memory_space<vmem>>, %arg6: memref<8x1xf32, #tpu.memory_space<vmem>>) attributes {dimension_semantics = [#tpu.dimension_semantics<parallel>, #tpu.dimension_semantics<arbitrary>], iteration_bounds = array<i64: 1, 1>, scalar_prefetch = 0 : i64, scratch_operands = 1 : i64, tpu.core_type = #tpu.core_type<tc>, window_params = [{transform_indices = @transform_0, window_bounds = array<i64: 8, 32>}, {transform_indices = @transform_1, window_bounds = array<i64: 32, 1>}, {pipeline_mode = #tpu.pipeline_mode<synchronous>, transform_indices = @transform_2, window_bounds = array<i64: 1, 1>}, {transform_indices = @transform_3, window_bounds = array<i64: 8, 1>}]} {
    %c0_i32 = arith.constant 0 : i32
    %0 = arith.cmpi eq, %arg1, %c0_i32 : i32
    %1 = arith.extui %0 : i1 to i32
    %c0_i32_0 = arith.constant 0 : i32
    %2 = arith.cmpi ne, %1, %c0_i32_0 : i32
    scf.if %2 {
      %cst_10 = arith.constant 0.000000e+00 : f32
      %12 = vector.broadcast %cst_10 : f32 to vector<8x1xf32>
      %c0_11 = arith.constant 0 : index
      %c0_12 = arith.constant 0 : index
      %13 = vector.load %arg6[%c0_11, %c0_12] : memref<8x1xf32, #tpu.memory_space<vmem>>, vector<8x1xf32>
      tpu.vector_store %arg6[%c0_11, %c0_12], %12 {strides = array<i32>} : memref<8x1xf32, #tpu.memory_space<vmem>>, vector<8x1xf32>,
    } else {
    }
    %c0 = arith.constant 0 : index
    %c0_1 = arith.constant 0 : index
    %3 = vector.load %arg2[%c0, %c0_1] : memref<8x32xf32, #tpu.memory_space<vmem>>, vector<8x32xf32>
    %c0_2 = arith.constant 0 : index
    %c0_3 = arith.constant 0 : index
    %4 = vector.load %arg6[%c0_2, %c0_3] : memref<8x1xf32, #tpu.memory_space<vmem>>, vector<8x1xf32>
    %c0_4 = arith.constant 0 : index
    %c0_5 = arith.constant 0 : index
    %5 = vector.load %arg3[%c0_4, %c0_5] : memref<32x1xf32, #tpu.memory_space<vmem>>, vector<32x1xf32>
    %cst = arith.constant dense<0.000000e+00> : vector<8x1xf32>
    %6 = tpu.matmul %3, %5, %cst {dimension_numbers = #tpu.dot_dimension_numbers<[1], [0], [0], [1], [0, 0, 1, 1], [], []>, precision = #tpu.contract_precision<fp32>} : vector<8x32xf32>, vector<32x1xf32>, vector<8x1xf32> -> vector<8x1xf32>
    %7 = arith.addf %4, %6 : vector<8x1xf32>
    %c0_6 = arith.constant 0 : index
    %c0_7 = arith.constant 0 : index
    %8 = vector.load %arg6[%c0_6, %c0_7] : memref<8x1xf32, #tpu.memory_space<vmem>>, vector<8x1xf32>
    tpu.vector_store %arg6[%c0_6, %c0_7], %7 {strides = array<i32>} : memref<8x1xf32, #tpu.memory_space<vmem>>, vector<8x1xf32>,
    %c0_i32_8 = arith.constant 0 : i32
    %9 = arith.cmpi eq, %arg1, %c0_i32_8 : i32
    %10 = arith.extui %9 : i1 to i32
    %c0_i32_9 = arith.constant 0 : i32
    %11 = arith.cmpi ne, %10, %c0_i32_9 : i32
    scf.if %11 {
      %c0_10 = arith.constant 0 : index
      %c0_11 = arith.constant 0 : index
      %12 = vector.load %arg6[%c0_10, %c0_11] : memref<8x1xf32, #tpu.memory_space<vmem>>, vector<8x1xf32>
      %c0_12 = arith.constant 0 : index
      %c0_13 = arith.constant 0 : index
      %13 = vector.load %arg4[%c0_12, %c0_13] : memref<1x1xf32, #tpu.memory_space<vmem>>, vector<1x1xf32>
      %14 = vector.broadcast %13 : vector<1x1xf32> to vector<8x1xf32>
      %15 = arith.addf %12, %14 : vector<8x1xf32>
      %16 = arith.negf %15 : vector<8x1xf32>
      %17 = math.exp %16 : vector<8x1xf32>
      %cst_14 = arith.constant 1.000000e+00 : f32
      %18 = vector.broadcast %cst_14 : f32 to vector<8x1xf32>
      %19 = arith.addf %18, %17 : vector<8x1xf32>
      %20 = arith.divf %18, %19 : vector<8x1xf32>
      %c0_15 = arith.constant 0 : index
      %c0_16 = arith.constant 0 : index
      %21 = vector.load %arg5[%c0_15, %c0_16] : memref<8x1xf32, #tpu.memory_space<vmem>>, vector<8x1xf32>
      tpu.vector_store %arg5[%c0_15, %c0_16], %20 {strides = array<i32>} : memref<8x1xf32, #tpu.memory_space<vmem>>, vector<8x1xf32>,
    } else {
    }
    return
  }
  func.func @transform_0(%arg0: i32, %arg1: i32) -> (i32, i32) {
    %c0_i32 = arith.constant 0 : i32
    return %arg0, %arg1 : i32, i32
  }
  func.func @transform_1(%arg0: i32, %arg1: i32) -> (i32, i32) {
    %c0_i32 = arith.constant 0 : i32
    %c0_i32_0 = arith.constant 0 : i32
    return %arg1, %c0_i32 : i32, i32
  }
  func.func @transform_2(%arg0: i32, %arg1: i32) -> (i32, i32) {
    %c0_i32 = arith.constant 0 : i32
    %c0_i32_0 = arith.constant 0 : i32
    %c0_i32_1 = arith.constant 0 : i32
    return %c0_i32, %c0_i32_0 : i32, i32
  }
  func.func @transform_3(%arg0: i32, %arg1: i32) -> (i32, i32) {
    %c0_i32 = arith.constant 0 : i32
    %c0_i32_0 = arith.constant 0 : i32
    return %arg0, %c0_i32 : i32, i32
  }
}

</mosaic_0001>

<bundles_post_ra>
// kernel: logistic_forward.1
= control target key start
LH: loop header
LB: loop body
LE: loop exit
PB: predicated region body
PF: predicated region fallthrough
CT: control target
= control target key end

     0   :  { %vm28_vm0 = vcmask 261120   ;;  %v647_v0 = vmov 0.0   ;;  %vm648_vm1 = vmmov 0   ;;  %vm20_vm2 = vcmask 7168   ;;  %s761_s1 = inlined_call_operand.vmem [shape: f32[32,1], index: 1, kind: input, shape index: {}]   ;;  %s762_s0 = inlined_call_operand.vmem [shape: f32[8,32], index: 0, kind: input, shape index: {}]   ;;  %s763_s2 = inlined_call_operand.<no memory space> [shape: f32[1,1], index: 2, kind: input, shape index: {}]   ;;  %s764_s3 = inlined_call_operand.vmem [shape: f32[8,1], index: 3, kind: output, shape index: {}]  }
   0x1   :  { %575 = vmatprep.subr.mxu0 %v647_v0  ;;  %v27_v1 = vld [vmem:[%s761_s1 + $0x18] sm:$0xff]  ;;  %v26_v2 = vld [vmem:[%s761_s1 + $0x10] sm:$0xff]  ;;  %v25_v3 = vld [vmem:[%s761_s1 + $0x8] sm:$0xff]  ;;  %586 = vmatprep.subr.mxu1 %v647_v0  ;;  %21 = vst.msk [vmem:[#allocation2] sm:$0xff] %vm20_vm2, %v647_v0  ;;  %v8_v32 = vstv %s763_s2 }
   0x2   :  { %v680_v4 = vand.u32 4294901760, %v27_v1  ;;  %v682_v5 = vand.u32 4294901760, %v26_v2  ;;  %v684_v6 = vand.u32 4294901760, %v25_v3  ;;  %v24_v7 = vld [vmem:[%s761_s1] sm:$0xff]  ;;  %583 = vmatprep.mubr.msk.f32.mxu0 %vm648_vm1, %v647_v0  ;;  %594 = vmatprep.mubr.msk.f32.mxu1 %vm648_vm1, %v647_v0  ;;  %9 = vst [vmem:[#allocation3] sm:$0x1] %v8_v32 }
   0x3   :  { %v22_v8 = vld [vmem:[%s762_s0] sm:$0xff]  ;;  %v696_v9 = vand.u32 4294901760, %v24_v7 }
   0x4   :  { %v30_v10 = vsel %vm28_vm0, %v22_v8, 0  ;;  %576 = vmatpush3.msra.mxu0 %v680_v4  ;;  %v137_v11 = vsub.f32 %v27_v1, %v680_v4  ;;  %v144_v13 = vsub.f32 %v26_v2, %v682_v5  ;;  %v151_v14 = vsub.f32 %v25_v3, %v684_v6 }
   0x5   :  { %v701_v12 = vand.u32 4294901760, %v30_v10  ;;  %577 = vmatprep.subr.mxu0 %v647_v0  ;;  %v158_v15 = vsub.f32 %v24_v7, %v696_v9 }
   0x6   :  { %578 = vmatpush3.msra.mxu0 %v682_v5  ;;  %v138_v16 = vand.u32 4294901760, %v137_v11  ;;  %v145_v18 = vand.u32 4294901760, %v144_v13  ;;  %v152_v19 = vand.u32 4294901760, %v151_v14 }
   0x7   :  { %v102_v17 = vsub.f32 %v30_v10, %v701_v12  ;;  %579 = vmatprep.subr.mxu0 %v647_v0  ;;  %v159_v20 = vand.u32 4294901760, %v158_v15 }
   0x8   :  { %580 = vmatpush3.msra.mxu0 %v684_v6  ;;  %v139_v21 = vsub.f32 %v137_v11, %v138_v16  ;;  %v146_v23 = vsub.f32 %v144_v13, %v145_v18  ;;  %v153_v24 = vsub.f32 %v151_v14, %v152_v19  ;;  %v23_v47 = vld [vmem:[#allocation2] sm:$0xff] }
   0x9   :  { %v103_v22 = vand.u32 4294901760, %v102_v17  ;;  %581 = vmatprep.subr.mxu0 %v647_v0  ;;  %v160_v28 = vsub.f32 %v158_v15, %v159_v20  ;;  %v543_v52 = vld [vmem:[#allocation3] ss:$0 sm:$0xff] }
   0xa   :  { %582 = vmatpush3.msra.mxu0 %v696_v9  ;;  %v140_v25 = vand.u32 4294901760, %v139_v21  ;;  %v147_v27 = vand.u32 4294901760, %v146_v23  ;;  %v154_v30 = vand.u32 4294901760, %v153_v24 }
   0xb   :  { %v104_v26 = vsub.f32 %v102_v17, %v103_v22  ;;  %597 = vmatprep.subr.mxu0 %v647_v0  ;;  %v161_v31 = vand.u32 4294901760, %v160_v28 }
   0xc   :  { %587 = vmatpush3.msra.mxu1 %v140_v25 }
   0xd   :  { %v105_v29 = vand.u32 4294901760, %v104_v26  ;;  %588 = vmatprep.subr.mxu1 %v647_v0 }
   0xe   :  { %589 = vmatpush3.msra.mxu1 %v147_v27 }
   0xf   :  { %584 = vmatmul.mubr.f32.vlgmr.msra.gmra.mxu0 %v105_v29  ;;  %590 = vmatprep.subr.mxu1 %v647_v0 }
  0x10   :  { %598 = vmatpush3.msra.mxu0 %v137_v11  ;;  %591 = vmatpush3.msra.mxu1 %v154_v30 }
  0x11   :  { %599 = vmatprep.subr.mxu0 %v647_v0  ;;  %592 = vmatprep.subr.mxu1 %v647_v0 }
  0x12   :  { %600 = vmatpush3.msra.mxu0 %v144_v13  ;;  %593 = vmatpush3.msra.mxu1 %v161_v31 }
  0x13   :  { %601 = vmatprep.subr.mxu0 %v647_v0  ;;  %595 = vmatmul.mubr.f32.vlgmr.msra.gmra.mxu1 %v701_v12 }
  0x14   :  { %602 = vmatpush3.msra.mxu0 %v151_v14  ;;  %608 = vmatprep.subr.mxu1 %v647_v0 }
  0x15   :  { %603 = vmatprep.subr.mxu0 %v647_v0  ;;  %605 = vmatprep.mubr.msk.f32.mxu0 %vm648_vm1, %v647_v0 }
  0x16   :  { %604 = vmatpush3.msra.mxu0 %v158_v15  ;;  %609 = vmatpush3.msra.mxu1 %v680_v4 }
  0x17   :  { %606 = vmatmul.mubr.f32.vlgmr.msra.gmra.mxu0 %v102_v17  ;;  %610 = vmatprep.subr.mxu1 %v647_v0 }
  0x18   :  { %619 = vmatprep.subr.mxu0 %v647_v0  ;;  %611 = vmatpush3.msra.mxu1 %v682_v5 }
  0x19   :  { %620 = vmatpush3.msra.mxu0 %v138_v16  ;;  %612 = vmatprep.subr.mxu1 %v647_v0 }
  0x1a   :  { %621 = vmatprep.subr.mxu0 %v647_v0  ;;  %613 = vmatpush3.msra.mxu1 %v684_v6 }
  0x1b   :  { %622 = vmatpush3.msra.mxu0 %v145_v18  ;;  %614 = vmatprep.subr.mxu1 %v647_v0 }
  0x1c   :  { %623 = vmatprep.subr.mxu0 %v647_v0  ;;  %615 = vmatpush3.msra.mxu1 %v696_v9 }
  0x1d   :  { %616 = vmatprep.mubr.msk.f32.mxu1 %vm648_vm1, %v647_v0  ;;  %624 = vmatpush3.msra.mxu0 %v152_v19 }
  0x1e   :  { %617 = vmatmul.mubr.f32.vlgmr.msra.gmra.mxu1 %v103_v22  ;;  %625 = vmatprep.subr.mxu0 %v647_v0 }
  0x1f   :  { %630 = vmatprep.subr.mxu1 %v647_v0  ;;  %626 = vmatpush3.msra.mxu0 %v159_v20 }
  0x20   :  { %627 = vmatprep.mubr.msk.f32.mxu0 %vm648_vm1, %v647_v0  ;;  %631 = vmatpush3.msra.mxu1 %v680_v4 }
  0x21   :  { %628 = vmatmul.mubr.f32.vlgmr.msra.gmra.mxu0 %v701_v12  ;;  %632 = vmatprep.subr.mxu1 %v647_v0 }
  0x22   :  { %638 = vmatprep.mubr.msk.f32.mxu1 %vm648_vm1, %v647_v0  ;;  %633 = vmatpush3.msra.mxu1 %v682_v5 }
  0x23   :  { %634 = vmatprep.subr.mxu1 %v647_v0 }
  0x24   :  { %635 = vmatpush3.msra.mxu1 %v684_v6 }
  0x25   :  { %636 = vmatprep.subr.mxu1 %v647_v0 }
  0x26   :  { %637 = vmatpush3.msra.mxu1 %v696_v9 }
  0x27   :  { %639 = vmatmul.mubr.f32.vlgmr.msra.gmra.mxu1 %v701_v12 }
  0xcf   :  { %v107_v33 = vpop.f32.mrf.mxu0 }
  0xd1   :  { %v585_v34 = vpop.f32.mrf.mxu0 }
  0xd3   :  { %v198_v35 = vpop.f32.mrf.mxu1 }
  0xd4   :  { %v199_v39 = vadd.f32 %v198_v35, %v107_v33 }
  0xd5   :  { %v596_v36 = vpop.f32.mrf.mxu1 }
  0xd7   :  { %v278_v37 = vpop.f32.mrf.mxu0 }
  0xd8   :  { %v279_v42 = vadd.f32 %v278_v37, %v199_v39 }
  0xd9   :  { %v607_v38 = vpop.f32.mrf.mxu0 }
  0xde   :  { %v355_v40 = vpop.f32.mrf.mxu1 }
  0xdf   :  { %v356_v44 = vadd.f32 %v355_v40, %v279_v42 }
  0xe0   :  { %v618_v41 = vpop.f32.mrf.mxu1 }
  0xe1   :  { %v438_v43 = vpop.f32.mrf.mxu0 }
  0xe2   :  { %v439_v46 = vadd.f32 %v438_v43, %v356_v44 }
  0xe3   :  { %v629_v45 = vpop.f32.mrf.mxu0 }
  0xe7   :  { %v513_v48 = vpop.f32.mrf.mxu1 }
  0xe8   :  { %v514_v49 = vadd.f32 %v513_v48, %v439_v46 }
  0xe9   :  { %v640_v50 = vpop.f32.mrf.mxu1 }
  0xea   :  { %v517_v51 = vadd.f32 %v514_v49, %v23_v47 }
  0xec   :  { %519 = vst.msk [vmem:[#allocation2] sm:$0xff] %vm20_vm2, %v517_v51 }
  0xf3   :  { %v523_v53 = vld [vmem:[#allocation2] sm:$0xff] }
  0xf4   :  { %v531_v54 = vadd.f32 %v543_v52, %v523_v53 }
  0xf6   :  { %v544_v55 = vmul.f32 -1.442695, %v531_v54 }
  0xf8   :  { %643 = vpow2.f32 %v544_v55 }
 0x105   :  { %v644_v56 = vpop.eup %643 }
 0x106   :  { %v535_v57 = vadd.f32 1.0, %v644_v56 }
 0x108   :  { %645 = vrcp.f32 %v535_v57 }
 0x115   :  { %v646_v58 = vpop.eup %645 }
 0x116   :  { %538 = vst.msk [vmem:[%s764_s3] sm:$0xff] %vm20_vm2, %v646_v58 }

</bundles_post_ra>
